<compile_context>
chip_gen: v5e
topology: v5e:2x2
jax: 0.10.0
libtpu: 0.0.40
codegen_flags: <defaults>
</compile_context>

<pallas_src>
import jax
import jax.numpy as jnp
from jax.experimental import pallas as pl
from jax.experimental.pallas import tpu as pltpu

# ----------------------------- model hyper-parameters -----------------------------
B = 2                       # batch size
HIST = 10                   # max_hist_len  (user nodes)
L = 8                       # max_list_len  (item nodes)
E = 8                       # embed_dim
N = HIST + L                # graph size (18)
NLAYERS = 2                 # args.n_layers  (slab layout / coefficient math specialized to 2)
ATTR_FNUM = 3               # dataset.attr_ft_num (glue only)
ITEM_NUM = 50
ATTR_NUM = 30

# packed VMEM slab layout (all section starts 8-row aligned -> no unaligned sublane slices)
SEC = 24                    # per-section row stride (N=18 padded to a multiple of 8)
ROW_I, ROW_A, ROW_A2 = 0, SEC, 2 * SEC     # identity, A, A^2
ROW_EMB = 3 * SEC                          # concatenated [user_emb; item_emb]
ROW_LAB = ROW_EMB + SEC                    # labels
SLAB_ROWS = ROW_LAB + B                    # 98
SLAB_COLS = N                              # 18
OUT_LANES = 128                            # single lane-dense output row

# SMEM scalar-slab layout: [softmax(layer_weights)[0..2], norm_scale, neighbor_weights[0..1]]
N_SCAL = (NLAYERS + 1) + 1 + NLAYERS       # = 6


# ----------------------------- the Pallas kernel -----------------------------
def lightgcnpp_kernel(scal_ref, slab_ref, out_ref):
    # scalars from SMEM
    lw0, lw1, lw2 = scal_ref[0], scal_ref[1], scal_ref[2]
    ns, nw0, nw1 = scal_ref[3], scal_ref[4], scal_ref[5]
    c1 = lw1 * ns * nw0                 # coefficient of A
    c2 = lw2 * ns * nw0 * nw1           # coefficient of A^2

    # slices of the packed VMEM slab (all static, 8-row aligned offsets)
    ident = slab_ref[ROW_I:ROW_I + N, :]            # (N, N)
    adj = slab_ref[ROW_A:ROW_A + N, :]              # (N, N)
    adj2 = slab_ref[ROW_A2:ROW_A2 + N, :]           # (N, N)
    e0 = slab_ref[ROW_EMB:ROW_EMB + N, :E]          # (N, E) = [user_emb; item_emb]
    y = slab_ref[ROW_LAB:ROW_LAB + B, :L]           # (B, L) labels

    # layer-weighted propagation collapsed into a single MXU dot:
    #   final = (lw0*I + lw1*ns*nw0*A + lw2*ns*nw0*nw1*A^2) @ e0
    M = lw0 * ident + c1 * adj + c2 * adj2          # 3 VPU FMAs on (N, N)
    acc = jnp.dot(M, e0, preferred_element_type=jnp.float32)   # (N, E)

    # mean_h(U @ I.T) == (mean_h U) @ I.T  -> one (1,E)x(L,E) dot, batch-independent
    u_mean = jnp.mean(acc[:HIST, :], axis=0, keepdims=True)     # (1, E)
    item_part = acc[HIST:, :]                                   # (L, E)
    z_row = jax.lax.dot_general(u_mean, item_part, (((1,), (1,)), ((), ())),
                                preferred_element_type=jnp.float32)   # (1, L) logits
    s_row = jax.nn.sigmoid(z_row)                               # module's `scores` (one row)

    # BCELoss(sigmoid(z), y) in logit space: mean(softplus(z) - y*z)
    z = jnp.broadcast_to(z_row, (B, L))
    softplus_z = jnp.maximum(z, 0.0) + jnp.log(1.0 + jnp.exp(-jnp.abs(z)))
    loss = jnp.sum(softplus_z - y * z, keepdims=True) * (1.0 / float(B * L))   # (1, 1)

    # single lane-dense output tile: lanes [0,L) = scores row, lane L = loss
    out_ref[...] = jnp.zeros((1, OUT_LANES), jnp.float32)
    out_ref[0:1, 0:L] = s_row
    out_ref[0:1, L:L + 1] = loss


@jax.jit
def lightgcnpp_pallas(labels, params):
    # parameter-only preprocessing (fused under jit)
    all_emb = jnp.concatenate([params["user_emb"], params["item_emb"]], axis=0)   # (N, E)
    lw = jax.nn.softmax(params["layer_weights"])
    scal = jnp.concatenate(
        [lw, params["norm_scale"], params["neighbor_weights"]]).astype(jnp.float32)   # (6,)

    # pack dynamic rows into the constant slab (fused dynamic-update-slices under jit)
    slab = params["slab_base"]
    slab = slab.at[ROW_EMB:ROW_EMB + N, :E].set(all_emb.astype(jnp.float32))
    slab = slab.at[ROW_LAB:ROW_LAB + B, :L].set(labels.astype(jnp.float32))

    out = pl.pallas_call(
        lightgcnpp_kernel,
        out_shape=jax.ShapeDtypeStruct((1, OUT_LANES), jnp.float32),
        in_specs=[pl.BlockSpec(memory_space=pltpu.MemorySpace.SMEM),   # scalar slab
                  pl.BlockSpec(memory_space=pltpu.MemorySpace.VMEM)],  # packed data slab
        out_specs=pl.BlockSpec(memory_space=pltpu.MemorySpace.VMEM),
    )(scal, slab)

    s_row = out[0:1, :L]
    scores = jnp.broadcast_to(s_row, (B, L))    # batch rows are identical in the module too
    loss = out[0, L]
    return scores, loss


# ----------------------------- plain-JAX glue (mirrors the PyTorch module) -----------------------------
def get_norm_adj_matrix():
    adj = jnp.zeros((N, N), jnp.float32)
    adj = adj.at[:HIST, HIST:].set(1.0)
    adj = adj.at[HIST:, :HIST].set(1.0)
    adj = adj + jnp.eye(N, dtype=jnp.float32)
    deg = jnp.sum(adj, axis=1)
    dinv = jnp.where(deg > 0.0, 1.0 / jnp.sqrt(deg), 0.0)
    return adj * dinv[:, None] * dinv[None, :]


def build_slab_base(norm_adj):
    """Constant part of the packed VMEM slab: [I; A; A^2] (+ zero-padded dynamic sections)."""
    slab = jnp.zeros((SLAB_ROWS, SLAB_COLS), jnp.float32)
    slab = slab.at[ROW_I:ROW_I + N, :].set(jnp.eye(N, dtype=jnp.float32))
    slab = slab.at[ROW_A:ROW_A + N, :].set(norm_adj)
    slab = slab.at[ROW_A2:ROW_A2 + N, :].set(norm_adj @ norm_adj)
    return slab


def process_input(params, iid_list, aid_list):
    """process_input (task='rerank', augment=False): embedding gathers + concat.
    LightGCN++'s forward only uses the batch size of this tensor (plus the labels)."""
    iid_emb = jnp.take(params["item_table"], iid_list, axis=0)                       # (B, L, E)
    attr_emb = jnp.take(params["attr_table"], aid_list, axis=0).reshape(B, L, ATTR_FNUM * E)
    return jnp.concatenate([iid_emb, attr_emb], axis=-1)                             # (B, L, 32)


# ----------------------------- pure-JAX reference (verbatim port of forward) -----------------------------
def reference_forward(labels, p):
    all_emb = jnp.concatenate([p["user_emb"], p["item_emb"]], axis=0)
    emb_list = [all_emb]
    cur = all_emb * p["norm_scale"][0]
    for l in range(NLAYERS):
        nb = p["norm_adj"] @ cur
        cur = nb * p["neighbor_weights"][l]
        emb_list.append(cur)
    stacked = jnp.stack(emb_list, axis=1)                       # (N, NLAYERS+1, E)
    w = jax.nn.softmax(p["layer_weights"])
    final = jnp.sum(stacked * w[None, :, None], axis=1)         # (N, E)
    user_all, item_all = final[:HIST], final[HIST:]
    user_b = jnp.broadcast_to(user_all[None], (B, HIST, E))
    item_b = jnp.broadcast_to(item_all[None], (B, L, E))
    scores = jnp.einsum("bhe,ble->bhl", user_b, item_b)         # bmm(U, I.T)
    scores = jax.nn.sigmoid(jnp.mean(scores, axis=1))           # (B, L)
    eps = 1e-12
    bce = -(labels * jnp.log(jnp.clip(scores, eps, 1.0))
            + (1.0 - labels) * jnp.log(jnp.clip(1.0 - scores, eps, 1.0)))
    return scores, jnp.mean(bce)


# ----------------------------- deterministic parameter init -----------------------------
def init_params(key):
    ks = jax.random.split(key, 8)
    p = {}
    p["user_emb"] = jax.random.normal(ks[0], (HIST, E), jnp.float32)          # torch.randn
    p["item_emb"] = jax.random.normal(ks[1], (L, E), jnp.float32)
    p["layer_weights"] = (1.0 + 0.3 * jax.random.normal(ks[2], (NLAYERS + 1,))).astype(jnp.float32)
    p["norm_scale"] = (1.0 + 0.1 * jax.random.normal(ks[3], (1,))).astype(jnp.float32)
    p["neighbor_weights"] = (1.0 + 0.3 * jax.random.normal(ks[4], (NLAYERS,))).astype(jnp.float32)
    p["norm_adj"] = get_norm_adj_matrix()
    p["slab_base"] = build_slab_base(p["norm_adj"])             # constant [I; A; A^2] stack
    # embedding tables for the process_input glue (unused by the LightGCN++ math itself)
    p["item_table"] = (0.1 * jax.random.normal(ks[5], (ITEM_NUM + 1, E))).astype(jnp.float32)
    p["attr_table"] = (0.1 * jax.random.normal(ks[6], (ATTR_NUM + 1, E))).astype(jnp.float32)
    return p


# ----------------------------- main -----------------------------
if __name__ == "__main__":
    key = jax.random.PRNGKey(0)
    kp, k1, k2, k3 = jax.random.split(key, 4)
    params = init_params(kp)

    # glue: process_input for task='rerank', augment=False
    iid_list = jax.random.randint(k1, (B, L), 0, ITEM_NUM + 1, dtype=jnp.int32)
    aid_list = jax.random.randint(k2, (B, L, ATTR_FNUM), 0, ATTR_NUM + 1, dtype=jnp.int32)
    item_emb = process_input(params, iid_list, aid_list)          # (B, L, 32); only B is consumed
    labels = jax.random.bernoulli(k3, 0.5, (B, L)).astype(jnp.float32)

    scores, loss = lightgcnpp_pallas(labels, params)
    jax.block_until_ready(scores)
    jax.block_until_ready(loss)

    # get_rerank_output assembly (second sigmoid on the already-sigmoided scores, as in the module)
    outputs = {"logits": jax.nn.sigmoid(scores), "labels": labels, "loss": loss}
    jax.block_until_ready(outputs["logits"])

    # sanity check against a pure-JAX port of the PyTorch forward
    ref_scores, ref_loss = reference_forward(labels, params)
    if not (jnp.allclose(scores, ref_scores, atol=5e-3, rtol=5e-3)
            and jnp.allclose(loss, ref_loss, atol=5e-3, rtol=5e-3)):
        raise AssertionError("Pallas kernel does not match reference")

    print("KERNEL_OK")
</pallas_src>

<mosaic_0001>
module attributes {stable_mosaic.version = 11 : i64} {
  func.func @lightgcnpp_kernel(%arg0: memref<6xf32, #tpu.memory_space<smem>>, %arg1: memref<98x18xf32, #tpu.memory_space<vmem>>, %arg2: memref<1x128xf32, #tpu.memory_space<vmem>>) attributes {dimension_semantics = [], scalar_prefetch = 0 : i64, scratch_operands = 0 : i64, tpu.core_type = #tpu.core_type<tc>} {
    %c0 = arith.constant 0 : index
    %0 = memref.load %arg0[%c0] : memref<6xf32, #tpu.memory_space<smem>>
    %c1 = arith.constant 1 : index
    %1 = memref.load %arg0[%c1] : memref<6xf32, #tpu.memory_space<smem>>
    %c2 = arith.constant 2 : index
    %2 = memref.load %arg0[%c2] : memref<6xf32, #tpu.memory_space<smem>>
    %c3 = arith.constant 3 : index
    %3 = memref.load %arg0[%c3] : memref<6xf32, #tpu.memory_space<smem>>
    %c4 = arith.constant 4 : index
    %4 = memref.load %arg0[%c4] : memref<6xf32, #tpu.memory_space<smem>>
    %c5 = arith.constant 5 : index
    %5 = memref.load %arg0[%c5] : memref<6xf32, #tpu.memory_space<smem>>
    %6 = arith.mulf %1, %3 : f32
    %7 = arith.mulf %6, %4 : f32
    %8 = arith.mulf %2, %3 : f32
    %9 = arith.mulf %8, %4 : f32
    %10 = arith.mulf %9, %5 : f32
    %c0_0 = arith.constant 0 : index
    %c0_1 = arith.constant 0 : index
    %11 = vector.load %arg1[%c0_0, %c0_1] : memref<98x18xf32, #tpu.memory_space<vmem>>, vector<18x18xf32>
    %c24 = arith.constant 24 : index
    %c0_2 = arith.constant 0 : index
    %12 = vector.load %arg1[%c24, %c0_2] : memref<98x18xf32, #tpu.memory_space<vmem>>, vector<18x18xf32>
    %c48 = arith.constant 48 : index
    %c0_3 = arith.constant 0 : index
    %13 = vector.load %arg1[%c48, %c0_3] : memref<98x18xf32, #tpu.memory_space<vmem>>, vector<18x18xf32>
    %c72 = arith.constant 72 : index
    %c0_4 = arith.constant 0 : index
    %14 = vector.load %arg1[%c72, %c0_4] : memref<98x18xf32, #tpu.memory_space<vmem>>, vector<18x8xf32>
    %c96 = arith.constant 96 : index
    %c0_5 = arith.constant 0 : index
    %15 = vector.load %arg1[%c96, %c0_5] : memref<98x18xf32, #tpu.memory_space<vmem>>, vector<2x8xf32>
    %16 = vector.broadcast %0 : f32 to vector<18x18xf32>
    %17 = arith.mulf %16, %11 : vector<18x18xf32>
    %18 = vector.broadcast %7 : f32 to vector<18x18xf32>
    %19 = arith.mulf %18, %12 : vector<18x18xf32>
    %20 = arith.addf %17, %19 : vector<18x18xf32>
    %21 = vector.broadcast %10 : f32 to vector<18x18xf32>
    %22 = arith.mulf %21, %13 : vector<18x18xf32>
    %23 = arith.addf %20, %22 : vector<18x18xf32>
    %cst = arith.constant dense<0.000000e+00> : vector<18x8xf32>
    %24 = tpu.matmul %23, %14, %cst {dimension_numbers = #tpu.dot_dimension_numbers<[1], [0], [0], [1], [0, 0, 1, 1], [], []>} : vector<18x18xf32>, vector<18x8xf32>, vector<18x8xf32> -> vector<18x8xf32>
    %25 = vector.extract_strided_slice %24 {offsets = [0, 0], sizes = [10, 8], strides = [1, 1]} : vector<18x8xf32> to vector<10x8xf32>
    %cst_6 = arith.constant dense<0.000000e+00> : vector<8xf32>
    %26 = vector.multi_reduction <add>, %25, %cst_6 [0] : vector<10x8xf32> to vector<8xf32>
    %27 = vector.shape_cast %26 : vector<8xf32> to vector<1x8xf32>
    %cst_7 = arith.constant 1.000000e+01 : f32
    %28 = vector.broadcast %cst_7 : f32 to vector<1x8xf32>
    %29 = arith.divf %27, %28 : vector<1x8xf32>
    %30 = vector.extract_strided_slice %24 {offsets = [10, 0], sizes = [8, 8], strides = [1, 1]} : vector<18x8xf32> to vector<8x8xf32>
    %cst_8 = arith.constant dense<0.000000e+00> : vector<1x8xf32>
    %31 = tpu.matmul %29, %30, %cst_8 {dimension_numbers = #tpu.dot_dimension_numbers<[1], [1], [0], [0], [0, 0, 1, 0], [], []>} : vector<1x8xf32>, vector<8x8xf32>, vector<1x8xf32> -> vector<1x8xf32>
    %32 = arith.negf %31 : vector<1x8xf32>
    %33 = math.exp %32 : vector<1x8xf32>
    %cst_9 = arith.constant 1.000000e+00 : f32
    %34 = vector.broadcast %cst_9 : f32 to vector<1x8xf32>
    %35 = arith.addf %34, %33 : vector<1x8xf32>
    %36 = arith.divf %34, %35 : vector<1x8xf32>
    %37 = vector.shape_cast %31 : vector<1x8xf32> to vector<1x8xf32>
    %38 = vector.broadcast %37 : vector<1x8xf32> to vector<2x8xf32>
    %cst_10 = arith.constant 0.000000e+00 : f32
    %39 = vector.broadcast %cst_10 : f32 to vector<2x8xf32>
    %40 = arith.maximumf %38, %39 : vector<2x8xf32>
    %41 = math.absf %38 : vector<2x8xf32>
    %cst_11 = arith.constant 0.000000e+00 : f32
    %42 = vector.broadcast %cst_11 : f32 to vector<2x8xf32>
    %43 = arith.subf %42, %41 : vector<2x8xf32>
    %44 = math.exp %43 : vector<2x8xf32>
    %cst_12 = arith.constant 1.000000e+00 : f32
    %45 = vector.broadcast %cst_12 : f32 to vector<2x8xf32>
    %46 = arith.addf %45, %44 : vector<2x8xf32>
    %47 = math.log %46 : vector<2x8xf32>
    %48 = arith.addf %40, %47 : vector<2x8xf32>
    %49 = arith.mulf %15, %38 : vector<2x8xf32>
    %50 = arith.subf %48, %49 : vector<2x8xf32>
    %51 = vector.shape_cast %50 : vector<2x8xf32> to vector<1x2x8xf32>
    %cst_13 = arith.constant dense<0.000000e+00> : vector<1xf32>
    %52 = vector.multi_reduction <add>, %51, %cst_13 [1, 2] : vector<1x2x8xf32> to vector<1xf32>
    %53 = vector.shape_cast %52 : vector<1xf32> to vector<1x1x1xf32>
    %54 = vector.extract %53[0, 0, 0] : f32 from vector<1x1x1xf32>
    %55 = vector.broadcast %54 : f32 to vector<1x1xf32>
    %cst_14 = arith.constant 6.250000e-02 : f32
    %56 = vector.broadcast %cst_14 : f32 to vector<1x1xf32>
    %57 = arith.mulf %55, %56 : vector<1x1xf32>
    %cst_15 = arith.constant 0.000000e+00 : f32
    %58 = vector.broadcast %cst_15 : f32 to vector<1x128xf32>
    %c0_16 = arith.constant 0 : index
    %c0_17 = arith.constant 0 : index
    %59 = vector.load %arg2[%c0_16, %c0_17] : memref<1x128xf32, #tpu.memory_space<vmem>>, vector<1x128xf32>
    tpu.vector_store %arg2[%c0_16, %c0_17], %58 {strides = array<i32>} : memref<1x128xf32, #tpu.memory_space<vmem>>, vector<1x128xf32>,
    %c0_18 = arith.constant 0 : index
    %c0_19 = arith.constant 0 : index
    %60 = vector.load %arg2[%c0_18, %c0_19] : memref<1x128xf32, #tpu.memory_space<vmem>>, vector<1x8xf32>
    tpu.vector_store %arg2[%c0_18, %c0_19], %36 {strides = array<i32>} : memref<1x128xf32, #tpu.memory_space<vmem>>, vector<1x8xf32>,
    %c0_20 = arith.constant 0 : index
    %c8 = arith.constant 8 : index
    %61 = vector.load %arg2[%c0_20, %c8] : memref<1x128xf32, #tpu.memory_space<vmem>>, vector<1x1xf32>
    tpu.vector_store %arg2[%c0_20, %c8], %57 {strides = array<i32>} : memref<1x128xf32, #tpu.memory_space<vmem>>, vector<1x1xf32>,
    return
  }
}

</mosaic_0001>

<bundles_post_ra>
// kernel: lightgcnpp_pallas.1
= control target key start
LH: loop header
LB: loop body
LE: loop exit
PB: predicated region body
PF: predicated region fallthrough
CT: control target
= control target key end

     0   :  { %7 = vsyncpa [#allocation3], 0  ;;  %s256_s12 = smov [#allocation2]   ;;  %s330_s0 = inlined_call_operand.vmem [shape: f32[6], index: 0, kind: input, shape index: {}]   ;;  %s331_s1 = inlined_call_operand.vmem [shape: f32[98,18], index: 1, kind: input, shape index: {}]   ;;  %s332_s2 = inlined_call_operand.vmem [shape: f32[1,128], index: 2, kind: output, shape index: {}]  }
   0x1   :  { %s13_s11 = sshll.u32 %s330_s0, 4  ;;  %s14_s11 = int_to_ptr.vmem [resolvable:$true] %s13_s11 }
   0x2   :  { %16 = dma.vmem_to_smem %s14_s11, 16, %s256_s12, [#allocation3]  }
   0x3   :  { %254 = dma.done.wait [#allocation3], 16  }
   0x4   :  { %255 = vsyncadd [#allocation3], 4294967280 }
   0x5   :  { %23 = sfence }
   0x6   :  { %v46_v0 = vld [vmem:[%s331_s1 + $0x58] sm:$0x3]  ;;  %vm76_vm0 = vcmask 1041408   ;;  %v45_v1 = vld [vmem:[%s331_s1 + $0x50] sm:$0xff]  ;;  %s24_s17 = sld [smem:[#allocation2]]  ;;  %v44_v2 = vld [vmem:[%s331_s1 + $0x48] sm:$0xff] }
   0x7   :  { %221 = vmatpush.msk.msra.mxu2 %vm76_vm0, %v46_v0  ;;  %222 = vmatpush.msk.msra.mxu3 %vm76_vm0, %v46_v0  ;;  %s209_s19 = sld [smem:[#allocation2 + $0x1]]  ;;  %v36_v3 = vld [vmem:[%s331_s1 + $0x8] sm:$0xff]  ;;  %v37_v5 = vld [vmem:[%s331_s1 + $0x10] sm:$0x3]  ;;  %v35_v6 = vld [vmem:[%s331_s1] sm:$0xff]  ;;  %vm66_vm1 = vcmask 146432  }
   0x8   :  { %214 = vmatpush.msk.msra.mxu0 %vm76_vm0, %v46_v0  ;;  %s210_s20 = sld [smem:[#allocation2 + $0x2]]  ;;  %v39_v7 = vld [vmem:[%s331_s1 + $0x20] sm:$0xff]  ;;  %v40_v8 = vld [vmem:[%s331_s1 + $0x28] sm:$0x3]  ;;  %v38_v9 = vld [vmem:[%s331_s1 + $0x18] sm:$0xff]  ;;  %v257_v30 = vmov 10.0  }
   0x9   :  { %223 = vmatpush.msra.mxu2 %v45_v1  ;;  %224 = vmatpush.msra.mxu3 %v45_v1  ;;  %s211_s21 = sld [smem:[#allocation2 + $0x3]]  ;;  %v42_v14 = vld [vmem:[%s331_s1 + $0x38] sm:$0xff]  ;;  %v43_v16 = vld [vmem:[%s331_s1 + $0x40] sm:$0x3]  ;;  %v41_v18 = vld [vmem:[%s331_s1 + $0x30] sm:$0xff]  ;;  %232 = vrcp.f32 %v257_v30  ;;  %vm106_vm2 = vcmask 64512  }
   0xa   :  { %94 = vmatpush.msra.mxu0 %v45_v1  ;;  %s212_s22 = sld [smem:[#allocation2 + $0x4]]  ;;  %vm108_vm3 = vcmask 58368   ;;  %vm127_vm4 = vcmask 1045504   ;;  %v258_v53 = vmov 0.0   ;;  %vm200_vm9 = vcmask 57344  }
   0xb   :  { %225 = vmatpush.msra.mxu2 %v44_v2  ;;  %226 = vmatpush.msra.mxu3 %v44_v2  ;;  %s213_s23 = sld [smem:[#allocation2 + $0x5]]  ;;  %199 = vst [vmem:[%s332_s2] sm:$0x1] %v258_v53  ;;  %vm202_vm11 = vcmask 65600  }
   0xc   :  { %95 = vmatpush.msra.mxu0 %v44_v2  ;;  %v48_v4 = vstv %s24_s17 }
   0xd   :  { %v50_v10 = vmul.f32 %v48_v4, %v36_v3  ;;  %v51_v11 = vmul.f32 %v48_v4, %v37_v5  ;;  %v49_v12 = vmul.f32 %v48_v4, %v35_v6 }
   0xf   :  { %s30_s24 = smul.f32 %s211_s21, %s209_s19  ;;  %v233_v31 = vpop.eup %232 }
  0x10   :  { %s32_s3 = smul.f32 %s211_s21, %s210_s20  ;;  %v118_v33 = vmul.f32 10.0, %v233_v31  ;;  %vm122_vm5 = vweird.f32 %v233_v31 }
  0x11   :  { %s31_s4 = smul.f32 %s212_s22, %s30_s24 }
  0x12   :  { %s33_s11 = smul.f32 %s212_s22, %s32_s3  ;;  %v119_v40 = vsub.f32 1.0, %v118_v33 }
  0x13   :  { %v52_v13 = vstv %s31_s4 }
  0x14   :  { %s34_s12 = smul.f32 %s213_s23, %s33_s11  ;;  %v54_v15 = vmul.f32 %v52_v13, %v39_v7  ;;  %v55_v17 = vmul.f32 %v52_v13, %v40_v8  ;;  %v53_v19 = vmul.f32 %v52_v13, %v38_v9  ;;  %v120_v44 = vmul.f32 %v233_v31, %v119_v40  ;;  %v47_v7 = vld [vmem:[%s331_s1 + $0x60] sm:$0x3] }
  0x16   :  { %v57_v20 = vadd.f32 %v54_v15, %v50_v10  ;;  %v59_v21 = vstv %s34_s12  ;;  %v58_v22 = vadd.f32 %v55_v17, %v51_v11  ;;  %v56_v23 = vadd.f32 %v53_v19, %v49_v12 }
  0x17   :  { %v61_v24 = vmul.f32 %v59_v21, %v42_v14  ;;  %v62_v25 = vmul.f32 %v59_v21, %v43_v16  ;;  %v60_v26 = vmul.f32 %v59_v21, %v41_v18  ;;  %v121_v47 = vadd.f32 %v233_v31, %v120_v44 }
  0x19   :  { %v64_v27 = vadd.f32 %v61_v24, %v57_v20  ;;  %v65_v28 = vadd.f32 %v62_v25, %v58_v22  ;;  %v63_v29 = vadd.f32 %v60_v26, %v56_v23  ;;  %v123_v50 = vsel %vm122_vm5, %v233_v31, %v121_v47 }
  0x1b   :  { %216 = vmatmul.msk.f32.vlgmr.msra.gmra.mxu2 %vm66_vm1, %v64_v27  ;;  %217 = vmatmul.msk.f32.vlgmr.msra.gmra.mxu3 %vm66_vm1, %v65_v28 }
  0x1c   :  { %215 = vmatmul.msk.f32.vlgmr.msra.gmra.mxu0 %vm66_vm1, %v63_v29 }
  0x99   :  { %v97_v32 = vpop.f32.mrf.mxu0 }
  0x9a   :  { %v107_v34 = vsel %vm106_vm2, %v97_v32, 0.0 }
  0x9e   :  { %v100_v35 = vpop.f32.mrf.mxu2  ;;  %v103_v36 = vpop.f32.mrf.mxu3 }
  0x9f   :  { %v109_v37 = vsel %vm108_vm3, %v100_v35, 0.0  ;;  %v128_v38 = vrot.slane %v100_v35, 2  ;;  %v129_v39 = vrot.slane %v103_v36, 2 }
  0xa0   :  { %v110_v41 = vadd.f32 %v109_v37, %v107_v34 }
  0xa1   :  { %v130_v42 = vsel %vm127_vm4, %v128_v38, %v129_v39 }
  0xa2   :  { %v111_v43 = vrot.slane %v110_v41, 4  ;;  %218 = vmatpush.xpose.msk.msra.mxu1 %vm106_vm2, %v130_v42 }
  0xa4   :  { %v112_v45 = vadd.f32 %v111_v43, %v110_v41 }
  0xa6   :  { %v113_v46 = vrot.slane %v112_v45, 2 }
  0xa8   :  { %v114_v48 = vadd.f32 %v113_v46, %v112_v45 }
  0xaa   :  { %v115_v49 = vrot.slane %v114_v48, 1 }
  0xac   :  { %v116_v51 = vadd.f32 %v115_v49, %v114_v48 }
  0xae   :  { %v124_v52 = vmul.f32 %v123_v50, %v116_v51 }
  0xb0   :  { %219 = vmatmul.msk.f32.vlgmr.msra.gmra.mxu1 %vm106_vm2, %v124_v52 }
 0x12d   :  { %v153_v54 = vpop.f32.mrf.mxu1 }
 0x12e   :  { %v220_v55 = vmul.f32 -1.442695, %v153_v54  ;;  %v175_v56 = vperm.slane %v153_v54, 0 }
 0x130   :  { %234 = vpow2.f32 %v220_v55  ;;  %v177_v57 = vand.u32 2147483647, %v175_v56  ;;  %v176_v8 = vmax.f32 %v175_v56, 0.0  ;;  %v185_v13 = vmul.f32 %v175_v56, %v47_v7 }
 0x132   :  { %v178_v58 = vsub.f32 0.0, %v177_v57 }
 0x134   :  { %v179_v59 = vmul.f32 1.442695, %v178_v58 }
 0x136   :  { %v235_v60 = vpop.eup %234  ;;  %236 = vpow2.f32 %v179_v59 }
 0x137   :  { %v159_v61 = vadd.f32 1.0, %v235_v60 }
 0x139   :  { %238 = vrcp.f32 %v159_v61  ;;  %v171_v3 = vand.u32 2147483648, %v159_v61  ;;  %v169_v5 = vand.u32 2147483647, %v159_v61  ;;  %vm165_vm7 = vweird.f32 %v159_v61 }
 0x13b   :  { %v172_v11 = vor.u32 1.1754944e-38, %v171_v3  ;;  %vm170_vm10 = vcmp.eq.f32.partialorder %v169_v5, 8.507059e+37 }
 0x13c   :  { %v237_v62 = vpop.eup %236 }
 0x13d   :  { %v181_v63 = vadd.f32 1.0, %v237_v62 }
 0x13f   :  { %v239_v0 = vpop.eup %238  ;;  %240 = vlog2.f32 %v181_v63 }
 0x140   :  { %v161_v1 = vmul.f32 %v239_v0, %v159_v61  ;;  %vm166_vm6 = vweird.f32 %v239_v0 }
 0x141   :  { %vm167_vm8 = vmor %vm165_vm7, %vm166_vm6 }
 0x142   :  { %v162_v2 = vsub.f32 1.0, %v161_v1 }
 0x144   :  { %v163_v4 = vmul.f32 %v239_v0, %v162_v2 }
 0x145   :  { %v241_v6 = vpop.eup %240 }
 0x146   :  { %v183_v9 = vmul.f32 0.6931472, %v241_v6  ;;  %v164_v10 = vadd.f32 %v239_v0, %v163_v4 }
 0x148   :  { %v184_v12 = vadd.f32 %v183_v9, %v176_v8  ;;  %v168_v14 = vsel %vm167_vm8, %v239_v0, %v164_v10 }
 0x149   :  { %v173_v15 = vsel %vm170_vm10, %v172_v11, %v168_v14 }
 0x14a   :  { %v186_v16 = vsub.f32 %v184_v12, %v185_v13  ;;  %201 = vst.msk [vmem:[%s332_s2] sm:$0x1] %vm200_vm9, %v173_v15 }
 0x14c   :  { %v187_v17 = vsel %vm108_vm3, %v186_v16, 0.0 }
 0x14d   :  { %188 = vadd.xlane.f32.xlu0 %v187_v17 }
 0x1c0   :  { %v189_v18 = vpop.xlane.xlu0 %188 }
 0x1c1   :  { %v190_v19 = vrot.slane %v189_v18, 4 }
 0x1c3   :  { %v191_v20 = vadd.f32 %v190_v19, %v189_v18 }
 0x1c5   :  { %v192_v21 = vrot.slane %v191_v20, 2 }
 0x1c7   :  { %v193_v22 = vadd.f32 %v192_v21, %v191_v20 }
 0x1c9   :  { %v194_v23 = vrot.slane %v193_v22, 1 }
 0x1cb   :  { %v195_v24 = vadd.f32 %v194_v23, %v193_v22 }
 0x1cd   :  { %227 = vpush %v195_v24 }
 0x1fe   :  { %s228_s1 = spop %227 }
 0x1ff   :  { %v197_v25 = vstv %s228_s1 }
 0x200   :  { %v198_v26 = vmul.f32 0.0625, %v197_v25 }
 0x202   :  { %203 = vst.msk [vmem:[%s332_s2] sm:$0x1] %vm202_vm11, %v198_v26 }
 0x203   :  { %208 = vsyncpa [#allocation3], 1 }

</bundles_post_ra>
